<compile_context>
chip_gen: v6e
topology: v6e:2x2x1
jax: 0.10.0
libtpu: 0.0.40
codegen_flags: <defaults>
</compile_context>

<pallas_src>
import functools

import jax
import jax.numpy as jnp
from jax import lax
from jax.experimental import pallas as pl
from jax.experimental.pallas import tpu as pltpu

MAX_NORM = 2.0  # nn.Embedding(..., max_norm=2)


def _round_up(x, m):
    return ((x + m - 1) // m) * m


def prep_table_kernel(tab_ref, w_ref, p_ref):
    """Renormalize the embedding table (max_norm=2) and fold it into the Linear weight.

    tab_ref : (V, E)  f32   raw embedding table (constant index map, tiny)
    w_ref   : (E, TS) f32   Linear weight tile: torch weight reshaped (S, E) then transposed
    p_ref   : (V, TS) f32   output tile of P[v, s] = sum_e renorm(tab)[v, e] * W_se[s, e]
    """
    tab = tab_ref[...]                                                # (V, E) f32
    sumsq = jnp.sum(tab * tab, axis=1, keepdims=True)                 # (V, 1)
    scale = jnp.minimum(1.0, MAX_NORM * lax.rsqrt(sumsq + 1e-12))     # EUP rsqrt, no sqrt+div
    tab_r = tab * scale                                               # renormalized rows
    p_ref[...] = jnp.dot(tab_r, w_ref[...], preferred_element_type=jnp.float32)


def modelnet_kernel(idx_ref, p_ref, b_ref, o_ref, acc_ref, *, tb, ts, chunk, vocab):
    """y[b] = sigmoid(sum_s P[idx[b, s], s] + bias), accumulated over S tiles.

    idx_ref : (TB, TS)    int32  token ids (streamed tile)
    p_ref   : (V, TS)     f32    folded table tile (streamed)
    b_ref   : (1, 1)      f32    bias (SMEM)
    o_ref   : (TB, 1)     f32    sigmoid output block
    acc_ref : (TB, CHUNK) f32    lane accumulator scratch (persists across the S grid axis)
    """
    k = pl.program_id(1)

    @pl.when(k == 0)
    def _init():
        acc_ref[...] = jnp.zeros_like(acc_ref)

    n_chunks = ts // chunk
    # Hoisted out of the chunk loop (JAX does not CSE broadcast_in_dim).
    iota_v = lax.broadcasted_iota(jnp.int32, (1, vocab, chunk), 1)

    def chunk_body(c, acc):
        s0 = pl.multiple_of(c * chunk, chunk)
        ids_c = idx_ref[:, pl.ds(s0, chunk)]                          # (TB, CHUNK) int32
        p_c = p_ref[:, pl.ds(s0, chunk)]                              # (V, CHUNK)  f32
        # One batched "gather" for the whole batch tile: one-hot select + sublane reduce over V.
        sel = jnp.where(ids_c[:, None, :] == iota_v, p_c[None, :, :], 0.0)   # (TB, V, CHUNK)
        return acc + jnp.sum(sel, axis=1)                             # (TB, CHUNK)

    partial = lax.fori_loop(0, n_chunks, chunk_body,
                            jnp.zeros((tb, chunk), jnp.float32),
                            unroll=n_chunks <= 8)
    acc_ref[...] += partial                                           # single full-tile update per step

    @pl.when(k == pl.num_programs(1) - 1)
    def _finalize():
        y = jnp.sum(acc_ref[...], axis=1, keepdims=True)              # (TB, 1)
        o_ref[...] = jax.nn.sigmoid(y + b_ref[0, 0]).astype(o_ref.dtype)


def modelnet_forward(idx, embed_table, w, b, *, tb=None, ts=None, chunk=128):
    """ModelNet forward.

    idx:         (B, S) integer token ids
    embed_table: (V, E) embedding weight
    w:           (1, S*E) Linear weight (torch layout: in_features = E*S after Flatten)
    b:           (1,) Linear bias
    """
    B, S = idx.shape
    V, E = embed_table.shape
    assert w.shape == (1, S * E) and b.shape == (1,)
    assert chunk % 128 == 0

    if tb is None:
        # Keep >= 2 batch blocks when possible so v7x's two TensorCores both get work.
        tb = B // 2 if (B % 2 == 0 and (B // 2) % 8 == 0) else B
    assert B % tb == 0 and (tb % 8 == 0 or tb == B)

    if ts is None:
        ts = min(2048, _round_up(S, chunk))
    assert ts % chunk == 0
    s_pad = _round_up(S, ts)

    # Pad S: zero weight columns => padded positions contribute exactly 0 (no in-kernel masking).
    idx_p = idx.astype(jnp.int32)
    if s_pad != S:
        idx_p = jnp.pad(idx_p, ((0, 0), (0, s_pad - S)))
    w_se = jnp.asarray(w, jnp.float32).reshape(S, E)                  # torch Flatten order: (s, e)
    if s_pad != S:
        w_se = jnp.pad(w_se, ((0, s_pad - S), (0, 0)))
    w_es = w_se.T                                                     # (E, S_pad): lane-dense tiles
    b2d = jnp.asarray(b, jnp.float32).reshape(1, 1)
    tab = jnp.asarray(embed_table, jnp.float32)

    # 1) One-time prep: renorm (max_norm=2) + fold table into the Linear weight -> P (V, S_pad) f32.
    p_tab = pl.pallas_call(
        prep_table_kernel,
        out_shape=jax.ShapeDtypeStruct((V, s_pad), jnp.float32),
        grid=(s_pad // ts,),
        in_specs=[
            pl.BlockSpec((V, E), lambda k: (0, 0)),                   # table: constant, tiny
            pl.BlockSpec((E, ts), lambda k: (0, k)),                  # weight: streamed S tiles
        ],
        out_specs=pl.BlockSpec((V, ts), lambda k: (0, k)),
        compiler_params=pltpu.CompilerParams(
            dimension_semantics=("parallel",),
            vmem_limit_bytes=32 * 1024 * 1024,
        ),
    )(tab, w_es)

    # 2) Main kernel: per-token gather of P + sum over S + bias + sigmoid.
    # TODO(synk): the one-hot gather does a V-wide compare per token; for very large vocabularies
    # (V >> a few thousand) switch to a DMA row-gather instead.
    kernel = functools.partial(modelnet_kernel, tb=tb, ts=ts, chunk=chunk, vocab=V)
    return pl.pallas_call(
        kernel,
        out_shape=jax.ShapeDtypeStruct((B, 1), jnp.float32),
        grid=(B // tb, s_pad // ts),
        in_specs=[
            pl.BlockSpec((tb, ts), lambda i, k: (i, k)),              # ids: streamed tiles
            pl.BlockSpec((V, ts), lambda i, k: (0, k)),               # P: streamed S tiles
            pl.BlockSpec(memory_space=pltpu.MemorySpace.SMEM),        # bias scalar in SMEM
        ],
        out_specs=pl.BlockSpec((tb, 1), lambda i, k: (i, 0)),
        scratch_shapes=[pltpu.VMEM((tb, chunk), jnp.float32)],
        compiler_params=pltpu.CompilerParams(
            dimension_semantics=("parallel", "arbitrary"),
            vmem_limit_bytes=32 * 1024 * 1024,
        ),
    )(idx_p, p_tab, b2d)


if __name__ == "__main__":
    # Small stand-in shapes (real model: S=14544, handled via padding + zero weight columns).
    # Explicit tb/ts so the grid is (2, 2): both the parallel batch axis and the accumulating
    # S reduction axis are actually exercised.
    num_words, embedding_size = 128, 32
    B, S = 16, 256

    key = jax.random.PRNGKey(0)
    k_idx, k_emb, k_w, k_b = jax.random.split(key, 4)

    idx = jax.random.randint(k_idx, (B, S), 0, num_words, dtype=jnp.int32)
    # Scale >1 so some rows actually trigger the max_norm=2 renormalization path.
    embed_table = jax.random.normal(k_emb, (num_words, embedding_size), jnp.float32) * 1.5
    w = jax.random.normal(k_w, (1, embedding_size * S), jnp.float32) * 0.05   # Linear.weight (1, S*E)
    b = jax.random.normal(k_b, (1,), jnp.float32) * 0.05                      # Linear.bias   (1,)

    out = modelnet_forward(idx, embed_table, w, b, tb=8, ts=128, chunk=128)
    jax.block_until_ready(out)
    assert out.shape == (B, 1)

    # Plain-JAX f32 reference (same once-per-call renormalization of all rows).
    sumsq = jnp.sum(embed_table * embed_table, axis=1, keepdims=True)
    scale = jnp.minimum(1.0, MAX_NORM * lax.rsqrt(sumsq + 1e-12))
    tab_ref = embed_table * scale
    emb = jnp.take(tab_ref, idx, axis=0)                                      # (B, S, E)
    y_ref = jax.nn.sigmoid(
        jnp.sum(emb * w.reshape(S, embedding_size)[None], axis=(1, 2))[:, None] + b[0]
    )
    assert jnp.allclose(out, y_ref, atol=3e-3, rtol=3e-3), (
        f"max abs err {jnp.max(jnp.abs(out - y_ref))}")

    print("KERNEL_OK")
</pallas_src>

<mosaic_0001>
module attributes {stable_mosaic.version = 11 : i64} {
  func.func @prep_table_kernel(%arg0: i32, %arg1: memref<128x32xf32, #tpu.memory_space<vmem>>, %arg2: memref<32x128xf32, #tpu.memory_space<vmem>>, %arg3: memref<128x128xf32, #tpu.memory_space<vmem>>) attributes {dimension_semantics = [#tpu.dimension_semantics<parallel>], iteration_bounds = array<i64: 2>, scalar_prefetch = 0 : i64, scratch_operands = 0 : i64, tpu.core_type = #tpu.core_type<tc>, window_params = [{pipeline_mode = #tpu.pipeline_mode<synchronous>, transform_indices = @transform_0, window_bounds = array<i64: 128, 32>}, {transform_indices = @transform_1, window_bounds = array<i64: 32, 128>}, {transform_indices = @transform_2, window_bounds = array<i64: 128, 128>}]} {
    %c0 = arith.constant 0 : index
    %c0_0 = arith.constant 0 : index
    %0 = vector.load %arg1[%c0, %c0_0] : memref<128x32xf32, #tpu.memory_space<vmem>>, vector<128x32xf32>
    %1 = arith.mulf %0, %0 : vector<128x32xf32>
    %cst = arith.constant dense<0.000000e+00> : vector<128xf32>
    %2 = vector.multi_reduction <add>, %1, %cst [1] : vector<128x32xf32> to vector<128xf32>
    %3 = vector.shape_cast %2 : vector<128xf32> to vector<128x1xf32>
    %cst_1 = arith.constant 9.99999996E-13 : f32
    %4 = vector.broadcast %cst_1 : f32 to vector<128x1xf32>
    %5 = arith.addf %3, %4 : vector<128x1xf32>
    %6 = math.rsqrt %5 : vector<128x1xf32>
    %cst_2 = arith.constant 2.000000e+00 : f32
    %7 = vector.broadcast %cst_2 : f32 to vector<128x1xf32>
    %8 = arith.mulf %7, %6 : vector<128x1xf32>
    %cst_3 = arith.constant 1.000000e+00 : f32
    %9 = vector.broadcast %cst_3 : f32 to vector<128x1xf32>
    %10 = arith.minimumf %9, %8 : vector<128x1xf32>
    %11 = vector.broadcast %10 : vector<128x1xf32> to vector<128x32xf32>
    %12 = arith.mulf %0, %11 : vector<128x32xf32>
    %c0_4 = arith.constant 0 : index
    %c0_5 = arith.constant 0 : index
    %13 = vector.load %arg2[%c0_4, %c0_5] : memref<32x128xf32, #tpu.memory_space<vmem>>, vector<32x128xf32>
    %cst_6 = arith.constant dense<0.000000e+00> : vector<128x128xf32>
    %14 = tpu.matmul %12, %13, %cst_6 {dimension_numbers = #tpu.dot_dimension_numbers<[1], [0], [0], [1], [0, 0, 1, 1], [], []>} : vector<128x32xf32>, vector<32x128xf32>, vector<128x128xf32> -> vector<128x128xf32>
    %c0_7 = arith.constant 0 : index
    %c0_8 = arith.constant 0 : index
    %15 = vector.load %arg3[%c0_7, %c0_8] : memref<128x128xf32, #tpu.memory_space<vmem>>, vector<128x128xf32>
    tpu.vector_store %arg3[%c0_7, %c0_8], %14 {strides = array<i32>} : memref<128x128xf32, #tpu.memory_space<vmem>>, vector<128x128xf32>,
    return
  }
  func.func @transform_0(%arg0: i32) -> (i32, i32) {
    %c0_i32 = arith.constant 0 : i32
    %c0_i32_0 = arith.constant 0 : i32
    %c0_i32_1 = arith.constant 0 : i32
    return %c0_i32, %c0_i32_0 : i32, i32
  }
  func.func @transform_1(%arg0: i32) -> (i32, i32) {
    %c0_i32 = arith.constant 0 : i32
    %c0_i32_0 = arith.constant 0 : i32
    return %c0_i32, %arg0 : i32, i32
  }
  func.func @transform_2(%arg0: i32) -> (i32, i32) {
    %c0_i32 = arith.constant 0 : i32
    %c0_i32_0 = arith.constant 0 : i32
    return %c0_i32, %arg0 : i32, i32
  }
}

</mosaic_0001>

<bundles_post_ra>
// kernel: tpu_custom_call.1
= control target key start
LH: loop header
LB: loop body
LE: loop exit
PB: predicated region body
PF: predicated region fallthrough
CT: control target
= control target key end

     0   :  { %7 = vsyncpa [#allocation4], 0  ;;  %s1177_s0 = inlined_call_operand.vmem [shape: f32[128,32], index: 0, kind: input, shape index: {}]   ;;  %s1178_s1 = inlined_call_operand.vmem [shape: f32[32,256], index: 1, kind: input, shape index: {}]   ;;  %s1179_s2 = inlined_call_operand.hbm [shape: f32[128,256], index: 2, kind: output, shape index: {}]  }
   0x1   :  { %9 = vsyncpa [#allocation4 + $0x1], 0  ;;  %s887_s9 = smov 0   ;;  %s889_s10 = smov 0  }
   0x2   :  { %s891_s11 = smov 0   ;;  %s893_s12 = smov 0  }
   0x3 LB: > { %s643_s13 = sadd.s32 4294967295, %s866_s12   ;;  %s644_s14 = sadd.s32 4294967294, %s866_s12   ;;  %s866_s12 = sphi %s893_s12, %s1185_s12   ;;  %s862_s11 = sphi %s891_s11, %s1184_s11   ;;  %s858_s10 = sphi %s889_s10, %s1183_s10   ;;  %s854_s9 = sphi %s887_s9, %s1182_s9  }
   0x4   : > { %s910_s15 = sadd.s32 1, %s866_s12   ;;  %s43_s16 = sadd.s32 1, %s862_s11 }
   0x5   : > { %s40_s17 = ssub.s32 %s866_s12, %s910_s15  ;;  %p50_p0 = scmp.ne.s32.totalorder %s862_s11, %s858_s10 }
   0x6   : > { %p41_p1 = scmp.eq.s32.totalorder %s40_s17, 0  ;;  %p51_p2 = scmp.eq.s32.totalorder %s866_s12, 0 }
   0x7   : > { %p80_p3 = scmp.eq.s32.totalorder %s643_s13, 1  ;;  %p85_p4 = scmp.ne.s32.totalorder %s858_s10, %s854_s9 }
   0x8   : > { %s923_s18 = scalar_select %p41_p1, %s862_s11, %s43_s16  }
   0x9   : > { %p52_p5 = por %p51_p2, %p50_p0  ;;  %p925_p6 = por %p80_p3, %p50_p0 }
   0xa   : > { %p86_p7 = scmp.eq.s32.totalorder %s644_s14, 1  ;;  %p646_p9 = scmp.ge.s32.totalorder %s866_s12, 2 }
   0xc   : > { %p929_p8 = por %p86_p7, %p85_p4  ;;  %105 = sbr.rel (%p646_p9) target bundleno = 23 (0x17), region = 20 }
  0x11   : > { %108 = sbr.rel (!%p52_p5) target bundleno = 23 (0x17), region = 24  ;;  %s110_s21 = sand.u32 (%p52_p5), 1, %s862_s11  }
  0x12   : > { %s648_s22 = sshll.u32 (%p52_p5), %s866_s12, 3  ;;  %s647_s23 = sshll.u32 (%p52_p5), %s110_s21, 5 }
  0x13   : > { %s114_s26 = scalar_lea.vmem (%p52_p5), %s1178_s1, %s648_s22  ;;  %s112_s27 = scalar_lea.vmem (%p52_p5), [#allocation2], %s647_s23 }
  0x14   : > { %v149_v0 = vld [vmem:[%s114_s26] sm:$0xff] (%p52_p5)  ;;  %v151_v1 = vld [vmem:[%s114_s26 + $0x10] sm:$0xff] (%p52_p5) }
  0x15   : > { %v153_v2 = vld [vmem:[%s114_s26 + $0x20] sm:$0xff] (%p52_p5)  ;;  %150 = vst [vmem:[%s112_s27] sm:$0xff] (%p52_p5), %v149_v0  ;;  %152 = vst [vmem:[%s112_s27 + $0x8] sm:$0xff] (%p52_p5), %v151_v1  ;;  %v155_v3 = vld [vmem:[%s114_s26 + $0x30] sm:$0xff] (%p52_p5) }
  0x16   : > { %154 = vst [vmem:[%s112_s27 + $0x10] sm:$0xff] %v153_v2  ;;  %156 = vst [vmem:[%s112_s27 + $0x18] sm:$0xff] %v155_v3 }
  0x17 PF: > { %p649_p10 = scmp.ge.s32.totalorder %s866_s12, 1  ;;  %p161_p11 = scmp.lt.s32.totalorder %s866_s12, 3 }
  0x19   : > { %p162_p12 = pnand %p649_p10, %p161_p11 }
  0x1a   : > { %s1070_s22 = sand.u32 (!%p162_p12), 1, %s858_s10   ;;  %s669_s27 = sshll.u32 (!%p162_p12), %s643_s13, 7 }
  0x1b   : > { %165 = sbr.rel (%p162_p12) target bundleno = 435 (0x1b3), region = 62  ;;  %s650_s23 = sshll.u32 (!%p162_p12), %s1070_s22, 5 }
  0x1c   : > { %s170_s24 = scalar_lea.vmem (!%p162_p12), [#allocation2], %s650_s23  ;;  %s651_s25 = sshll.u32 (!%p162_p12), %s1070_s22, 7 }
  0x1d   : > { %s1108_s26 = scalar_lea.vmem (!%p162_p12), [#allocation3], %s651_s25  ;;  %s1128_s3 = scalar_lea.hbm (!%p162_p12), %s1179_s2, %s669_s27 }
  0x1e   : > { %s576_s28 = sshll.u32 (!%p162_p12), %s1108_s26, 4  ;;  %s564_s13 = scalar_lea.sflag (!%p162_p12), [#allocation4], %s1070_s22  ;;  %s1131_s28 = int_to_ptr.vmem [resolvable:$true] %s576_s28 }
  0x1f   : > { %s806_s4 = scalar_lea.vmem (!%p162_p12), %s1131_s28, 2048  ;;  %s868_s5 = smov (!%p162_p12), [#allocation3]  }
  0x20   : > { %v946_v4 = vld [vmem:[%s1177_s0 + $0x8] sm:$0xff]  ;;  %vm221_vm0 = vcmask 261120   ;;  %v951_v5 = vld [vmem:[%s1177_s0] sm:$0xff]  ;;  %v974_v12 = vld [vmem:[%s1177_s0 + $0x50] sm:$0xff]  ;;  %p807_p13 = scmp.ne.s32.totalorder %s1131_s28, %s806_s4  ;;  %s810_s6 = sshll.u32 %s868_s5, 4  ;;  %s811_s6 = int_to_ptr.vmem [resolvable:$false] %s810_s6 }
  0x21   : > { %v956_v6 = vld [vmem:[%s1177_s0 + $0x48] sm:$0xff]  ;;  %v206_v7 = vmul.f32 %v946_v4, %v946_v4  ;;  %v205_v8 = vmul.f32 %v951_v5, %v951_v5  ;;  %v967_v10 = vld [vmem:[%s1177_s0 + $0x40] sm:$0xff]  ;;  %v979_v13 = vld [vmem:[%s1177_s0 + $0x10] sm:$0xff]  ;;  %v215_v18 = vmul.f32 %v974_v12, %v974_v12  ;;  %s812_s7 = scalar_lea.vmem %s811_s6, 4096  ;;  %p813_p2 = scmp.lt.s32.totalorder %s1131_s28, %s811_s6 }
  0x22   : > { %v214_v9 = vmul.f32 %v956_v6, %v956_v6  ;;  %v213_v11 = vmul.f32 %v967_v10, %v967_v10  ;;  %v207_v19 = vmul.f32 %v979_v13, %v979_v13  ;;  %v992_v20 = vld [vmem:[%s1177_s0 + $0x58] sm:$0xff]  ;;  %v1008_v26 = vld [vmem:[%s1177_s0 + $0x60] sm:$0xff]  ;;  %v1024_v32 = vld [vmem:[%s1177_s0 + $0x68] sm:$0xff]  ;;  %p808_p0 = pnand %p807_p13, %p925_p6  ;;  %p814_p3 = scmp.lt.s32.totalorder %s812_s7, %s806_s4 }
  0x23   : > { %v225_v14 = vsel %vm221_vm0, %v206_v7, 0.0  ;;  %v222_v15 = vsel %vm221_vm0, %v205_v8, 0.0  ;;  %v997_v21 = vld [vmem:[%s1177_s0 + $0x18] sm:$0xff]  ;;  %v252_v22 = vsel %vm221_vm0, %v215_v18, 0.0  ;;  %v216_v24 = vmul.f32 %v992_v20, %v992_v20  ;;  %v1013_v27 = vld [vmem:[%s1177_s0 + $0x20] sm:$0xff]  ;;  %v1029_v33 = vld [vmem:[%s1177_s0 + $0x28] sm:$0xff] }
  0x24   : > { %226 = vadd.xlane.f32.xlu1 %v225_v14  ;;  %223 = vadd.xlane.f32.xlu0 %v222_v15  ;;  %v249_v16 = vsel %vm221_vm0, %v214_v9, 0.0  ;;  %v246_v17 = vsel %vm221_vm0, %v213_v11, 0.0  ;;  %v228_v23 = vsel %vm221_vm0, %v207_v19, 0.0  ;;  %v208_v25 = vmul.f32 %v997_v21, %v997_v21  ;;  %v1040_v38 = vld [vmem:[%s1177_s0 + $0x70] sm:$0xff]  ;;  %v1056_v44 = vld [vmem:[%s1177_s0 + $0x78] sm:$0xff]  ;;  %v351_v54 = vld [vmem:[%s170_s24 + $0x8] sm:$0xff]  ;;  %p809_p1 = pneg %p808_p0  ;;  %p815_p4 = por %p814_p3, %p813_p2 }
  0x25   : > { %v255_v28 = vsel %vm221_vm0, %v216_v24, 0.0  ;;  %v217_v30 = vmul.f32 %v1008_v26, %v1008_v26  ;;  %v209_v31 = vmul.f32 %v1013_v27, %v1013_v27  ;;  %v218_v36 = vmul.f32 %v1024_v32, %v1024_v32  ;;  %v1045_v39 = vld [vmem:[%s1177_s0 + $0x30] sm:$0xff]  ;;  %v1061_v45 = vld [vmem:[%s1177_s0 + $0x38] sm:$0xff]  ;;  %v350_v55 = vld [vmem:[%s170_s24] sm:$0xff] }
  0x26   : > { %v231_v29 = vsel %vm221_vm0, %v208_v25, 0.0  ;;  %v210_v37 = vmul.f32 %v1029_v33, %v1029_v33  ;;  %v219_v42 = vmul.f32 %v1040_v38, %v1040_v38  ;;  %v211_v43 = vmul.f32 %v1045_v39, %v1045_v39  ;;  %v353_v52 = vld [vmem:[%s170_s24 + $0x18] sm:$0xff]  ;;  %v352_v53 = vld [vmem:[%s170_s24 + $0x10] sm:$0xff]  ;;  %p816_p5 = pnand %p815_p4, %p809_p1 }
  0x27   : > { %v258_v34 = vsel %vm221_vm0, %v217_v30, 0.0  ;;  %v234_v35 = vsel %vm221_vm0, %v209_v31, 0.0  ;;  %v261_v40 = vsel %vm221_vm0, %v218_v36, 0.0  ;;  %v220_v48 = vmul.f32 %v1056_v44, %v1056_v44  ;;  %692 = vmatprep.subr.mxu0 %v353_v52  ;;  %724 = vmatprep.subr.mxu1 %v353_v52 }
  0x28   : > { %250 = vadd.xlane.f32.xlu1 %v249_v16  ;;  %247 = vadd.xlane.f32.xlu0 %v246_v17  ;;  %v237_v41 = vsel %vm221_vm0, %v210_v37, 0.0  ;;  %v264_v46 = vsel %vm221_vm0, %v219_v42, 0.0  ;;  %v240_v47 = vsel %vm221_vm0, %v211_v43, 0.0  ;;  %v212_v49 = vmul.f32 %v1061_v45, %v1061_v45 }
  0x29   : > { %v267_v50 = vsel %vm221_vm0, %v220_v48, 0.0  ;;  %693 = vmatpush3.msra.mxu0 %v353_v52  ;;  %728 = vmatpush3.msra.mxu1 %v353_v52 }
  0x2a   : > { %v243_v51 = vsel %vm221_vm0, %v212_v49, 0.0  ;;  %694 = vmatprep.subr.mxu0 %v352_v53  ;;  %725 = vmatprep.subr.mxu1 %v352_v53 }
  0x2b   : > { %695 = vmatpush3.msra.mxu0 %v352_v53  ;;  %729 = vmatpush3.msra.mxu1 %v352_v53 }
  0x2c   : > { %253 = vadd.xlane.f32.xlu1 %v252_v22  ;;  %229 = vadd.xlane.f32.xlu0 %v228_v23 }
  0x2d   : > { %696 = vmatprep.subr.mxu0 %v351_v54  ;;  %726 = vmatprep.subr.mxu1 %v351_v54 }
  0x2e   : > { %697 = vmatpush3.msra.mxu0 %v351_v54  ;;  %730 = vmatpush3.msra.mxu1 %v351_v54 }
  0x2f   : > { %698 = vmatprep.subr.mxu0 %v350_v55  ;;  %727 = vmatprep.subr.mxu1 %v350_v55 }
  0x30   : > { %256 = vadd.xlane.f32.xlu1 %v255_v28  ;;  %232 = vadd.xlane.f32.xlu0 %v231_v29 }
  0x31   : > { %699 = vmatpush3.msra.mxu0 %v350_v55  ;;  %731 = vmatpush3.msra.mxu1 %v350_v55 }
  0x34   : > { %259 = vadd.xlane.f32.xlu1 %v258_v34  ;;  %235 = vadd.xlane.f32.xlu0 %v234_v35 }
  0x38   : > { %262 = vadd.xlane.f32.xlu1 %v261_v40  ;;  %238 = vadd.xlane.f32.xlu0 %v237_v41 }
  0x3c   : > { %265 = vadd.xlane.f32.xlu1 %v264_v46  ;;  %241 = vadd.xlane.f32.xlu0 %v240_v47 }
  0x40   : > { %268 = vadd.xlane.f32.xlu1 %v267_v50  ;;  %244 = vadd.xlane.f32.xlu0 %v243_v51 }
  0xad   : > { %v227_v56 = vpop.xlane.xlu1 %226  ;;  %v224_v57 = vpop.xlane.xlu0 %223 }
  0xae   : > { %v271_v58 = vadd.f32 1e-12, %v227_v56  ;;  %v270_v59 = vadd.f32 1e-12, %v224_v57 }
  0xb0   : > { %774 = vrsqrt.f32 %v271_v58 }
  0xb1   : > { %776 = vrsqrt.f32 %v270_v59  ;;  %v251_v60 = vpop.xlane.xlu1 %250  ;;  %v248_v61 = vpop.xlane.xlu0 %247 }
  0xb2   : > { %v279_v62 = vadd.f32 1e-12, %v251_v60  ;;  %v278_v63 = vadd.f32 1e-12, %v248_v61 }
  0xb4   : > { %778 = vrsqrt.f32 %v279_v62 }
  0xb5   : > { %780 = vrsqrt.f32 %v278_v63  ;;  %v254_v0 = vpop.xlane.xlu1 %253  ;;  %v230_v1 = vpop.xlane.xlu0 %229 }
  0xb6   : > { %v280_v2 = vadd.f32 1e-12, %v254_v0  ;;  %v272_v3 = vadd.f32 1e-12, %v230_v1 }
  0xb8   : > { %782 = vrsqrt.f32 %v280_v2 }
  0xb9   : > { %784 = vrsqrt.f32 %v272_v3  ;;  %v257_v7 = vpop.xlane.xlu1 %256  ;;  %v233_v8 = vpop.xlane.xlu0 %232 }
  0xba   : > { %v281_v9 = vadd.f32 1e-12, %v257_v7  ;;  %v273_v11 = vadd.f32 1e-12, %v233_v8 }
  0xbc   : > { %786 = vrsqrt.f32 %v281_v9 }
  0xbd   : > { %v775_v14 = vpop.eup %774  ;;  %788 = vrsqrt.f32 %v273_v11  ;;  %v260_v15 = vpop.xlane.xlu1 %259 }
  0xbe   : > { %v236_v16 = vpop.xlane.xlu0 %235  ;;  %v777_v17 = vpop.eup %776  ;;  %v303_v18 = vmul.f32 2.0, %v775_v14  ;;  %v282_v19 = vadd.f32 1e-12, %v260_v15 }
  0xbf   : > { %v274_v22 = vadd.f32 1e-12, %v236_v16  ;;  %v302_v23 = vmul.f32 2.0, %v777_v17 }
  0xc0   : > { %v319_v24 = vmin.f32 %v303_v18, 1.0  ;;  %790 = vrsqrt.f32 %v282_v19 }
  0xc1   : > { %v779_v25 = vpop.eup %778  ;;  %792 = vrsqrt.f32 %v274_v22  ;;  %v263_v28 = vpop.xlane.xlu1 %262  ;;  %v318_v30 = vmin.f32 %v302_v23, 1.0 }
  0xc2   : > { %v239_v29 = vpop.xlane.xlu0 %238  ;;  %v781_v31 = vpop.eup %780  ;;  %v335_v34 = vmul.f32 %v319_v24, %v946_v4  ;;  %v311_v35 = vmul.f32 2.0, %v779_v25  ;;  %v283_v36 = vadd.f32 1e-12, %v263_v28 }
  0xc3   : > { %v275_v37 = vadd.f32 1e-12, %v239_v29  ;;  %v334_v40 = vmul.f32 %v318_v30, %v951_v5  ;;  %v310_v41 = vmul.f32 2.0, %v781_v31 }
  0xc4   : > { %v327_v42 = vmin.f32 %v311_v35, 1.0  ;;  %794 = vrsqrt.f32 %v283_v36 }
  0xc5   : > { %v783_v43 = vpop.eup %782  ;;  %796 = vrsqrt.f32 %v275_v37  ;;  %700 = vmatprep.mubr.msk.f32.mxu0 %vm221_vm0, %v334_v40  ;;  %v266_v46 = vpop.xlane.xlu1 %265  ;;  %v326_v48 = vmin.f32 %v310_v41, 1.0 }
  0xc6   : > { %v242_v47 = vpop.xlane.xlu0 %241  ;;  %v785_v49 = vpop.eup %784  ;;  %v343_v50 = vmul.f32 %v327_v42, %v956_v6  ;;  %v312_v51 = vmul.f32 2.0, %v783_v43  ;;  %v284_v4 = vadd.f32 1e-12, %v266_v46  ;;  %701 = vmatmul.mubr.msk.f32.vlgmr.msra.gmra.mxu0 %vm221_vm0, %v335_v34 }
  0xc7   : > { %v276_v52 = vadd.f32 1e-12, %v242_v47  ;;  %v304_v53 = vmul.f32 2.0, %v785_v49  ;;  %v342_v5 = vmul.f32 %v326_v48, %v967_v10 }
  0xc8   : > { %v328_v54 = vmin.f32 %v312_v51, 1.0  ;;  %798 = vrsqrt.f32 %v284_v4 }
  0xc9   : > { %v787_v55 = vpop.eup %786  ;;  %v320_v56 = vmin.f32 %v304_v53, 1.0  ;;  %800 = vrsqrt.f32 %v276_v52  ;;  %712 = vmatprep.mubr.msk.f32.mxu1 %vm221_vm0, %v342_v5  ;;  %v269_v57 = vpop.xlane.xlu1 %268 }
  0xca   : > { %v245_v58 = vpop.xlane.xlu0 %244  ;;  %v789_v59 = vpop.eup %788  ;;  %v344_v6 = vmul.f32 %v328_v54, %v974_v12  ;;  %v313_v60 = vmul.f32 2.0, %v787_v55  ;;  %v285_v61 = vadd.f32 1e-12, %v269_v57  ;;  %713 = vmatmul.mubr.msk.f32.vlgmr.msra.gmra.mxu1 %vm221_vm0, %v343_v50 }
  0xcb   : > { %v277_v62 = vadd.f32 1e-12, %v245_v58  ;;  %v336_v63 = vmul.f32 %v320_v56, %v979_v13  ;;  %v305_v10 = vmul.f32 2.0, %v789_v59 }
  0xcc   : > { %v329_v0 = vmin.f32 %v313_v60, 1.0  ;;  %802 = vrsqrt.f32 %v285_v61  ;;  %715 = vmatprep.mubr.msk.f32.mxu1 %vm221_vm0, %v344_v6 }
  0xcd   : > { %v791_v1 = vpop.eup %790  ;;  %v321_v2 = vmin.f32 %v305_v10, 1.0  ;;  %804 = vrsqrt.f32 %v277_v62  ;;  %703 = vmatprep.mubr.msk.f32.mxu0 %vm221_vm0, %v336_v63 }
  0xce   : > { %v793_v3 = vpop.eup %792  ;;  %v345_v12 = vmul.f32 %v329_v0, %v992_v20  ;;  %v314_v7 = vmul.f32 2.0, %v791_v1 }
  0xcf   : > { %v337_v8 = vmul.f32 %v321_v2, %v997_v21  ;;  %v306_v9 = vmul.f32 2.0, %v793_v3 }
  0xd0   : > { %v330_v11 = vmin.f32 %v314_v7, 1.0  ;;  %716 = vmatmul.mubr.msk.f32.gmra.mxu1 %vm221_vm0, %v345_v12 }
  0xd1   : > { %v795_v13 = vpop.eup %794  ;;  %v322_v14 = vmin.f32 %v306_v9, 1.0  ;;  %704 = vmatmul.mubr.msk.f32.gmra.mxu0 %vm221_vm0, %v337_v8 }
  0xd2   : > { %v797_v15 = vpop.eup %796  ;;  %v346_v16 = vmul.f32 %v330_v11, %v1008_v26  ;;  %v315_v17 = vmul.f32 2.0, %v795_v13 }
  0xd3   : > { %v338_v18 = vmul.f32 %v322_v14, %v1013_v27  ;;  %v307_v19 = vmul.f32 2.0, %v797_v15 }
  0xd4   : > { %v331_v22 = vmin.f32 %v315_v17, 1.0  ;;  %718 = vmatprep.mubr.msk.f32.mxu1 %vm221_vm0, %v346_v16 }
  0xd5   : > { %v799_v20 = vpop.eup %798  ;;  %v323_v21 = vmin.f32 %v307_v19, 1.0  ;;  %706 = vmatprep.mubr.msk.f32.mxu0 %vm221_vm0, %v338_v18 }
  0xd6   : > { %v801_v23 = vpop.eup %800  ;;  %v347_v24 = vmul.f32 %v331_v22, %v1024_v32  ;;  %v316_v25 = vmul.f32 2.0, %v799_v20 }
  0xd7   : > { %v339_v28 = vmul.f32 %v323_v21, %v1029_v33  ;;  %v308_v29 = vmul.f32 2.0, %v801_v23 }
  0xd8   : > { %v332_v30 = vmin.f32 %v316_v25, 1.0  ;;  %719 = vmatmul.mubr.msk.f32.gmra.mxu1 %vm221_vm0, %v347_v24 }
  0xd9   : > { %v803_v26 = vpop.eup %802  ;;  %v324_v27 = vmin.f32 %v308_v29, 1.0  ;;  %707 = vmatmul.mubr.msk.f32.gmra.mxu0 %vm221_vm0, %v339_v28 }
  0xda   : > { %v805_v31 = vpop.eup %804  ;;  %v348_v34 = vmul.f32 %v332_v30, %v1040_v38  ;;  %v317_v35 = vmul.f32 2.0, %v803_v26 }
  0xdb   : > { %v340_v36 = vmul.f32 %v324_v27, %v1045_v39  ;;  %v309_v37 = vmul.f32 2.0, %v805_v31 }
  0xdc   : > { %v333_v32 = vmin.f32 %v317_v35, 1.0  ;;  %721 = vmatprep.mubr.msk.f32.mxu1 %vm221_vm0, %v348_v34 }
  0xdd   : > { %v325_v33 = vmin.f32 %v309_v37, 1.0  ;;  %709 = vmatprep.mubr.msk.f32.mxu0 %vm221_vm0, %v340_v36 }
  0xde   : > { %v349_v40 = vmul.f32 %v333_v32, %v1056_v44 }
  0xdf   : > { %v341_v41 = vmul.f32 %v325_v33, %v1061_v45 }
  0xe0   : > { %722 = vmatmul.mubr.msk.f32.gmra.mxu1 %vm221_vm0, %v349_v40 }
  0xe1   : > { %710 = vmatmul.mubr.msk.f32.gmra.mxu0 %vm221_vm0, %v341_v41 }
 0x186   : > { %v702_v38 = vpop.f32.mrf.mxu0 }
 0x187   : > { %548 = vst [vmem:[%s1108_s26 + $0x8] sm:$0xff] %v702_v38 }
 0x188   : > { %v468_v39 = vpop.f32.mrf.mxu0 }
 0x189   : > { %547 = vst [vmem:[%s1108_s26] sm:$0xff] %v468_v39 }
 0x18a   : > { %v714_v44 = vpop.f32.mrf.mxu1 }
 0x18b   : > { %556 = vst [vmem:[%s1108_s26 + $0x48] sm:$0xff] %v714_v44 }
 0x18c   : > { %v508_v45 = vpop.f32.mrf.mxu1 }
 0x18d   : > { %555 = vst [vmem:[%s1108_s26 + $0x40] sm:$0xff] %v508_v45 }
 0x190   : > { %v717_v42 = vpop.f32.mrf.mxu1 }
 0x191   : > { %v705_v43 = vpop.f32.mrf.mxu0  ;;  %558 = vst [vmem:[%s1108_s26 + $0x58] sm:$0xff] %v717_v42 }
 0x192   : > { %550 = vst [vmem:[%s1108_s26 + $0x18] sm:$0xff] %v705_v43  ;;  %v518_v46 = vpop.f32.mrf.mxu1 }
 0x193   : > { %v478_v47 = vpop.f32.mrf.mxu0  ;;  %557 = vst [vmem:[%s1108_s26 + $0x50] sm:$0xff] %v518_v46 }
 0x194   : > { %549 = vst [vmem:[%s1108_s26 + $0x10] sm:$0xff] %v478_v47 }
 0x198   : > { %v720_v48 = vpop.f32.mrf.mxu1 }
 0x199   : > { %v708_v49 = vpop.f32.mrf.mxu0  ;;  %560 = vst [vmem:[%s1108_s26 + $0x68] sm:$0xff] %v720_v48 }
 0x19a   : > { %552 = vst [vmem:[%s1108_s26 + $0x28] sm:$0xff] %v708_v49  ;;  %v528_v50 = vpop.f32.mrf.mxu1 }
 0x19b   : > { %v488_v51 = vpop.f32.mrf.mxu0  ;;  %559 = vst [vmem:[%s1108_s26 + $0x60] sm:$0xff] %v528_v50 }
 0x19c   : > { %551 = vst [vmem:[%s1108_s26 + $0x20] sm:$0xff] %v488_v51 }
 0x1a0   : > { %v723_v4 = vpop.f32.mrf.mxu1 }
 0x1a1   : > { %v711_v52 = vpop.f32.mrf.mxu0  ;;  %562 = vst [vmem:[%s1108_s26 + $0x78] sm:$0xff] %v723_v4 }
 0x1a2   : > { %554 = vst [vmem:[%s1108_s26 + $0x38] sm:$0xff] %v711_v52  ;;  %v538_v53 = vpop.f32.mrf.mxu1 }
 0x1a3   : > { %v498_v5 = vpop.f32.mrf.mxu0  ;;  %561 = vst [vmem:[%s1108_s26 + $0x70] sm:$0xff] %v538_v53 }
 0x1a4   : > { %553 = vst [vmem:[%s1108_s26 + $0x30] sm:$0xff] %v498_v5 }
 0x1a5   : > { %819 = shalt.err (!%p816_p5)
}
 0x1a6   : > { %s820_s8 = scalar_lea.hbm %s1128_s3, 2048  ;;  %s824_s17 = scalar_lea.hbm %s1179_s2, 4096 }
 0x1a7   : > { %p821_p7 = scmp.ne.s32.totalorder %s1128_s3, %s820_s8  ;;  %p825_p12 = scmp.lt.s32.totalorder %s1128_s3, %s1179_s2 }
 0x1a8   : > { %p826_p13 = scmp.lt.s32.totalorder %s824_s17, %s820_s8 }
 0x1a9   : > { %p822_p10 = pnand %p821_p7, %p925_p6 }
 0x1aa   : > { %p827_p0 = por %p826_p13, %p825_p12 }
 0x1ab   : > { %p823_p11 = pneg %p822_p10 }
 0x1ad   : > { %p828_p1 = pnand %p827_p0, %p823_p11 }
 0x1af   : > { %831 = shalt.err (!%p828_p1)
}
 0x1b0   : > { %s869_s24 = smov 128   ;;  %s870_s25 = smov 256  }
 0x1b1   : > { %s871_s26 = smov 8  }
 0x1b2   : > { %732 = dma.vmem_to_hbm [thread:$0]  (%p925_p6), %s1131_s28, 2048, %s1128_s3, %s564_s13, %s869_s24, %s870_s25, %s871_s26  }
 0x1b3 PF: > { %s591_s27 = sand.u32 1, %s854_s9   ;;  %p735_p2 = pnand %p646_p9, %p929_p8 }
 0x1b4   : > { %s592_s29 = scalar_lea.sflag [#allocation4], %s591_s27 }
 0x1b5   : > { %p736_p3 = pneg %p735_p2 }
 0x1b7   : > { %849 = dma.done.wait (%p736_p3), %s592_s29, 2048  }
 0x1b8   : > { %851 = vsyncadd (%p736_p3), %s592_s29, 4294965248  ;;  %p12_p4 = scmp.ge.s32.totalorder %s910_s15, 4   ;;  %s1182_s9 = smov %s858_s10 }
 0x1b9   : > { %s1183_s10 = smov %s862_s11  ;;  %s1184_s11 = smov %s923_s18 }
 0x1ba   : > { %s1185_s12 = smov %s910_s15  ;;  %14 = sbr.rel (!%p12_p4) target bundleno = 3 (0x3), region = 106 }
 0x1bf   :  { %597 = vsyncpa [#allocation4], 1 }
 0x1c0   :  { %599 = vsyncpa [#allocation4 + $0x1], 1 }

</bundles_post_ra>
